<compile_context>
chip_gen: v7x
topology: tpu7x:2x2x1
jax: 0.10.0
libtpu: 0.0.40
codegen_flags: <defaults>
</compile_context>

<pallas_src>
import functools

import jax
import jax.numpy as jnp
from jax.experimental import pallas as pl
from jax.experimental.pallas import tpu as pltpu


def _round_up(x, m):
    return ((x + m - 1) // m) * m


def _vmem_capacity_bytes():
    """Physical VMEM of the current generation (fallback: v7x's 64 MiB)."""
    try:
        cap = getattr(pltpu.get_tpu_info(), "vmem_capacity_bytes", None)
        if cap:
            return int(cap)
    except Exception:
        pass
    return 64 * 1024 * 1024


def _vmem_cost_bytes(tile, pd, x_itemsize):
    """VMEM model for one grid step.

    Resident (pd, pd) Wax^T / Va^T / block-ones + (1, pd) bias, each
    double-buffered by the default pipeline (constant index_map does not stop
    the allocation); double-buffered x/out streams; f32 in-kernel
    intermediates (at, e/pt, scratch) with slack for Mosaic internals.
    """
    weights = 2 * (3 * pd * pd + pd) * 4
    streams = 2 * 2 * tile * pd * x_itemsize
    interm = 6 * tile * pd * 4
    return weights + streams + interm


def _choose_row_tile(packed_rows, pd, requested, x_itemsize, budget):
    """Largest packed-row tile that fits `budget` and leaves >= ~4 grid steps."""
    if packed_rows < 8:
        return packed_rows
    if _vmem_cost_bytes(8, pd, x_itemsize) > budget:
        # TODO(synk): column-tile the (pd, pd) weights over a second grid axis
        # when they alone exceed VMEM (fp32 D >~ 2.5K on v7x's 64 MiB).
        raise ValueError(
            f"feature_dim weights ({pd}x{pd}) exceed the VMEM budget "
            f"({budget} bytes); weight column-tiling is not implemented.")
    tile = max(8, _round_up(min(requested, packed_rows), 8))
    # >= ~4 grid steps so both v7x TensorCores get work and the per-core
    # prefetch/writeback pipeline stays overlapped.
    tile = min(tile, max(8, _round_up(-(-packed_rows // 4), 8)))
    while tile > 8 and _vmem_cost_bytes(tile, pd, x_itemsize) > budget:
        tile = max(8, _round_up(tile // 2, 8))
    if tile > packed_rows:
        tile = packed_rows
    return tile


def _attention_kernel(x_ref, wax_ref, b_ref, va_ref, *rest, segmented):
    """One row-tile of the attention gating computation.

    x_ref:   (TM, PD) packed input rows (PD = P * D lanes)
    wax_ref: (PD, PD) block-diagonal Wax^T       -- resident
    b_ref:   (1, PD)  Wax bias tiled P times     -- resident
    va_ref:  (PD, PD) block-diagonal Va^T        -- resident
    rest:    [(PD, PD) block-diagonal ones]?, (TM, PD) output
    """
    if segmented:
        ones_ref, o_ref = rest
    else:
        (o_ref,) = rest

    x = x_ref[...]  # keep native dtype; MXU accumulates in f32 below.

    # at = tanh(Xt @ Wax^T + b)   -- block-diagonal weights keep groups independent.
    at = jnp.dot(x, wax_ref[...], preferred_element_type=jnp.float32)
    at = jnp.tanh(at + b_ref[...])

    # at = at @ Va^T
    at = jnp.dot(at, va_ref[...], preferred_element_type=jnp.float32)

    # Segmented softmax over each D-lane group.  Subtracting the row-global
    # max (instead of the per-group max) is exact for the softmax ratio (it is
    # a per-row constant and cancels); it only risks 0/0 if one group's values
    # sit ~88 below another group's max, impossible here since |at| is bounded
    # by the L1 norm of Va's rows (tanh output is in [-1, 1]).
    m = jnp.max(at, axis=-1, keepdims=True)
    e = jnp.exp(at - m)
    if segmented:
        # Per-group sum broadcast to every lane of the group: one MXU matmul
        # against the block-diagonal all-ones matrix (MXU is otherwise idle).
        denom = jnp.dot(e, ones_ref[...], preferred_element_type=jnp.float32)
    else:
        denom = jnp.sum(e, axis=-1, keepdims=True)
    # approx=True -> EUP vrcp slot; exp/tanh dominate the EUP anyway.
    pt = e * pl.reciprocal(denom, approx=True)

    # x_tilda = Xt * pt
    o_ref[...] = (x * pt).astype(o_ref.dtype)


@functools.partial(jax.jit, static_argnames=("row_tile",))
def attention_forward(xt, wax_weight, wax_bias, va_weight, row_tile=1024):
    """xt: (B, T, D). wax_weight/va_weight: (D, D) in PyTorch (out, in) layout."""
    B, T, D = xt.shape
    rows = B * T
    x_itemsize = jnp.dtype(xt.dtype).itemsize

    # Lane packing factor: P original rows share one 128-lane vreg row.
    P = max(1, 128 // D) if D < 128 else 1

    x2d = xt.reshape(rows, D)
    pad = (-rows) % P
    if pad:
        # Tiny pad (< P rows) only to make the lane-packing reshape legal.
        x2d = jnp.pad(x2d, ((0, pad), (0, 0)))
    rows_p = rows + pad
    packed_rows = rows_p // P
    PD = P * D
    xp = x2d.reshape(packed_rows, PD)          # row-major -> free reshape

    # PyTorch Linear stores weight as (out, in); kernel consumes (in, out).
    # TODO(synk): for very large D, pre-transpose the weights once outside the
    # step jit to avoid a per-call D*D HBM transpose pass.
    wax_t = wax_weight.T
    va_t = va_weight.T
    if P > 1:
        eye_w = jnp.eye(P, dtype=wax_t.dtype)
        wax_blk = jnp.kron(eye_w, wax_t)                       # (PD, PD)
        va_blk = jnp.kron(eye_w, va_t)                         # (PD, PD)
        b_blk = jnp.tile(wax_bias, P).reshape(1, PD)           # (1, PD)
        ones_blk = jnp.kron(jnp.eye(P, dtype=jnp.float32),
                            jnp.ones((D, D), jnp.float32))     # (PD, PD)
    else:
        wax_blk, va_blk = wax_t, va_t
        b_blk = wax_bias.reshape(1, D)
        ones_blk = None

    cap = _vmem_capacity_bytes()
    budget = int(cap * 0.7)
    tile = _choose_row_tile(packed_rows, PD, row_tile, x_itemsize, budget)
    needed = _vmem_cost_bytes(tile, PD, x_itemsize)
    vmem_limit = int(min(max(2 * needed, 32 * 1024 * 1024), int(cap * 0.8)))

    grid = (pl.cdiv(packed_rows, tile),)       # ragged last block is fine:
    # out-of-bounds reads hit garbage rows whose results are discarded on store.

    in_specs = [
        pl.BlockSpec((tile, PD), lambda i: (i, 0)),   # x rows (streamed)
        pl.BlockSpec((PD, PD), lambda i: (0, 0)),     # block-diag Wax^T (resident)
        pl.BlockSpec((1, PD), lambda i: (0, 0)),      # tiled bias       (resident)
        pl.BlockSpec((PD, PD), lambda i: (0, 0)),     # block-diag Va^T  (resident)
    ]
    inputs = [xp, wax_blk, b_blk, va_blk]
    if P > 1:
        in_specs.append(pl.BlockSpec((PD, PD), lambda i: (0, 0)))  # block-ones
        inputs.append(ones_blk)

    out_packed = pl.pallas_call(
        functools.partial(_attention_kernel, segmented=(P > 1)),
        out_shape=jax.ShapeDtypeStruct((packed_rows, PD), xt.dtype),
        grid=grid,
        in_specs=in_specs,
        out_specs=pl.BlockSpec((tile, PD), lambda i: (i, 0)),
        compiler_params=pltpu.CompilerParams(
            dimension_semantics=("parallel",),
            vmem_limit_bytes=vmem_limit,
        ),
    )(*inputs)

    out2d = out_packed.reshape(rows_p, D)
    if pad:
        out2d = out2d[:rows]
    return out2d.reshape(B, T, D)


def _reference_forward(xt, wax_weight, wax_bias, va_weight):
    at = jnp.tanh(jnp.einsum("btd,od->bto", xt, wax_weight) + wax_bias)
    at = jnp.einsum("btd,od->bto", at, va_weight)
    pt = jax.nn.softmax(at, axis=-1)
    return xt * pt


if __name__ == "__main__":
    # Small shapes consistent with the module: batch=2, seq=8, feature_dim=32.
    B, T, D = 2, 8, 32

    key = jax.random.PRNGKey(0)
    k_x, k_w1, k_b1, k_w2 = jax.random.split(key, 4)

    xt = jax.random.normal(k_x, (B, T, D), dtype=jnp.float32)
    # PyTorch Linear stores weight as (out, in).
    wax_weight = jax.random.normal(k_w1, (D, D), dtype=jnp.float32) * 0.1
    wax_bias = jax.random.normal(k_b1, (D,), dtype=jnp.float32) * 0.1
    va_weight = jax.random.normal(k_w2, (D, D), dtype=jnp.float32) * 0.1

    out = attention_forward(xt, wax_weight, wax_bias, va_weight)
    out = jax.block_until_ready(out)

    ref = _reference_forward(xt, wax_weight, wax_bias, va_weight)
    assert out.shape == (B, T, D)
    # Tolerance covers the approximate EUP reciprocal in the softmax denominator.
    assert jnp.allclose(out, ref, atol=5e-3, rtol=5e-3), "mismatch vs reference"

    print("KERNEL_OK")
</pallas_src>

<mosaic_0001>
module attributes {stable_mosaic.version = 11 : i64} {
  func.func @_attention_kernel(%arg0: i32, %arg1: memref<4x128xf32, #tpu.memory_space<vmem>>, %arg2: memref<128x128xf32, #tpu.memory_space<vmem>>, %arg3: memref<1x128xf32, #tpu.memory_space<vmem>>, %arg4: memref<128x128xf32, #tpu.memory_space<vmem>>, %arg5: memref<128x128xf32, #tpu.memory_space<vmem>>, %arg6: memref<4x128xf32, #tpu.memory_space<vmem>>) attributes {dimension_semantics = [#tpu.dimension_semantics<parallel>], iteration_bounds = array<i64: 1>, scalar_prefetch = 0 : i64, scratch_operands = 0 : i64, tpu.core_type = #tpu.core_type<tc>, window_params = [{transform_indices = @transform_0, window_bounds = array<i64: 4, 128>}, {pipeline_mode = #tpu.pipeline_mode<synchronous>, transform_indices = @transform_1, window_bounds = array<i64: 128, 128>}, {pipeline_mode = #tpu.pipeline_mode<synchronous>, transform_indices = @transform_2, window_bounds = array<i64: 1, 128>}, {pipeline_mode = #tpu.pipeline_mode<synchronous>, transform_indices = @transform_3, window_bounds = array<i64: 128, 128>}, {pipeline_mode = #tpu.pipeline_mode<synchronous>, transform_indices = @transform_4, window_bounds = array<i64: 128, 128>}, {transform_indices = @transform_5, window_bounds = array<i64: 4, 128>}]} {
    %c0 = arith.constant 0 : index
    %c0_0 = arith.constant 0 : index
    %0 = vector.load %arg1[%c0, %c0_0] : memref<4x128xf32, #tpu.memory_space<vmem>>, vector<4x128xf32>
    %c0_1 = arith.constant 0 : index
    %c0_2 = arith.constant 0 : index
    %1 = vector.load %arg2[%c0_1, %c0_2] : memref<128x128xf32, #tpu.memory_space<vmem>>, vector<128x128xf32>
    %cst = arith.constant dense<0.000000e+00> : vector<4x128xf32>
    %2 = tpu.matmul %0, %1, %cst {dimension_numbers = #tpu.dot_dimension_numbers<[1], [0], [0], [1], [0, 0, 1, 1], [], []>} : vector<4x128xf32>, vector<128x128xf32>, vector<4x128xf32> -> vector<4x128xf32>
    %c0_3 = arith.constant 0 : index
    %c0_4 = arith.constant 0 : index
    %3 = vector.load %arg3[%c0_3, %c0_4] : memref<1x128xf32, #tpu.memory_space<vmem>>, vector<1x128xf32>
    %4 = vector.broadcast %3 : vector<1x128xf32> to vector<4x128xf32>
    %5 = arith.addf %2, %4 : vector<4x128xf32>
    %6 = math.tanh %5 : vector<4x128xf32>
    %c0_5 = arith.constant 0 : index
    %c0_6 = arith.constant 0 : index
    %7 = vector.load %arg4[%c0_5, %c0_6] : memref<128x128xf32, #tpu.memory_space<vmem>>, vector<128x128xf32>
    %cst_7 = arith.constant dense<0.000000e+00> : vector<4x128xf32>
    %8 = tpu.matmul %6, %7, %cst_7 {dimension_numbers = #tpu.dot_dimension_numbers<[1], [0], [0], [1], [0, 0, 1, 1], [], []>} : vector<4x128xf32>, vector<128x128xf32>, vector<4x128xf32> -> vector<4x128xf32>
    %cst_8 = arith.constant dense<0xFF800000> : vector<4xf32>
    %9 = vector.multi_reduction <maximumf>, %8, %cst_8 [1] : vector<4x128xf32> to vector<4xf32>
    %10 = vector.shape_cast %9 : vector<4xf32> to vector<4x1xf32>
    %11 = vector.broadcast %10 : vector<4x1xf32> to vector<4x128xf32>
    %12 = arith.subf %8, %11 : vector<4x128xf32>
    %13 = math.exp %12 : vector<4x128xf32>
    %c0_9 = arith.constant 0 : index
    %c0_10 = arith.constant 0 : index
    %14 = vector.load %arg5[%c0_9, %c0_10] : memref<128x128xf32, #tpu.memory_space<vmem>>, vector<128x128xf32>
    %cst_11 = arith.constant dense<0.000000e+00> : vector<4x128xf32>
    %15 = tpu.matmul %13, %14, %cst_11 {dimension_numbers = #tpu.dot_dimension_numbers<[1], [0], [0], [1], [0, 0, 1, 1], [], []>} : vector<4x128xf32>, vector<128x128xf32>, vector<4x128xf32> -> vector<4x128xf32>
    %16 = tpu.reciprocal %15 {approx = true} : vector<4x128xf32> -> vector<4x128xf32>
    %17 = arith.mulf %13, %16 : vector<4x128xf32>
    %18 = arith.mulf %0, %17 : vector<4x128xf32>
    %c0_12 = arith.constant 0 : index
    %c0_13 = arith.constant 0 : index
    %19 = vector.load %arg6[%c0_12, %c0_13] : memref<4x128xf32, #tpu.memory_space<vmem>>, vector<4x128xf32>
    tpu.vector_store %arg6[%c0_12, %c0_13], %18 {strides = array<i32>} : memref<4x128xf32, #tpu.memory_space<vmem>>, vector<4x128xf32>,
    return
  }
  func.func @transform_0(%arg0: i32) -> (i32, i32) {
    %c0_i32 = arith.constant 0 : i32
    %c0_i32_0 = arith.constant 0 : i32
    return %arg0, %c0_i32 : i32, i32
  }
  func.func @transform_1(%arg0: i32) -> (i32, i32) {
    %c0_i32 = arith.constant 0 : i32
    %c0_i32_0 = arith.constant 0 : i32
    %c0_i32_1 = arith.constant 0 : i32
    return %c0_i32, %c0_i32_0 : i32, i32
  }
  func.func @transform_2(%arg0: i32) -> (i32, i32) {
    %c0_i32 = arith.constant 0 : i32
    %c0_i32_0 = arith.constant 0 : i32
    %c0_i32_1 = arith.constant 0 : i32
    return %c0_i32, %c0_i32_0 : i32, i32
  }
  func.func @transform_3(%arg0: i32) -> (i32, i32) {
    %c0_i32 = arith.constant 0 : i32
    %c0_i32_0 = arith.constant 0 : i32
    %c0_i32_1 = arith.constant 0 : i32
    return %c0_i32, %c0_i32_0 : i32, i32
  }
  func.func @transform_4(%arg0: i32) -> (i32, i32) {
    %c0_i32 = arith.constant 0 : i32
    %c0_i32_0 = arith.constant 0 : i32
    %c0_i32_1 = arith.constant 0 : i32
    return %c0_i32, %c0_i32_0 : i32, i32
  }
  func.func @transform_5(%arg0: i32) -> (i32, i32) {
    %c0_i32 = arith.constant 0 : i32
    %c0_i32_0 = arith.constant 0 : i32
    return %arg0, %c0_i32 : i32, i32
  }
}

</mosaic_0001>

<bundles_post_ra>
// kernel: tile.8
= control target key start
LH: loop header
LB: loop body
LE: loop exit
PB: predicated region body
PF: predicated region fallthrough
CT: control target
= control target key end

     0   :  { %s22_s0 = inlined_call_operand.vmem [shape: f32[32], index: 0, kind: input, shape index: {}]   ;;  %s23_s1 = inlined_call_operand.vmem [shape: f32[4,32], index: 1, kind: output, shape index: {}]  }
   0x1   :  { %v4_v0 = vld [vmem:[%s22_s0] ss:$0 sm:$0xff] }
   0x2   :  { %5 = vst [vmem:[%s23_s1] sm:$0xf] %v4_v0 }

// kernel: tile.9
= control target key start
LH: loop header
LB: loop body
LE: loop exit
PB: predicated region body
PF: predicated region fallthrough
CT: control target
= control target key end

     0   :  { %vm7_vm0 = vcmask 261120   ;;  %s37_s8 = smov 32   ;;  %s38_s9 = smov 64   ;;  %vm13_vm1 = vcmask 1048320   ;;  %vm19_vm2 = vcmask 785920   ;;  %vm25_vm3 = vcmask 523520   ;;  %s55_s0 = inlined_call_operand.vmem [shape: f32[4,32], index: 0, kind: input, shape index: {}]   ;;  %s56_s1 = inlined_call_operand.vmem [shape: f32[1,128], index: 1, kind: output, shape index: {}]  }
   0x1   :  { %v4_v0 = vld [vmem:[%s55_s0] sm:$0xf]  ;;  %s36_s0 = smov 96  }
   0x2   :  { %5 = vst [vmem:[#allocation1] sm:$0xf] %v4_v0 }
   0x9   :  { %v10_v1 = vld [vmem:[#allocation1 + $0x3] sm:$0x1]   ;;  %v22_v2 = vld [vmem:[#allocation1 + $0x1] sm:$0x1]   ;;  %v6_v3 = vld [vmem:[#allocation1] sm:$0x1]  }
   0xa   :  { %11 = vrot.lane.b32.xlu0 %v10_v1, %s36_s0  ;;  %23 = vrot.lane.b32.xlu1 %v22_v2, %s37_s8  ;;  %v16_v4 = vld [vmem:[#allocation1 + $0x2] sm:$0x1]   ;;  %8 = vst.msk [vmem:[#allocation0] sm:$0x1] %vm7_vm0, %v6_v3  }
   0xe   :  { %17 = vrot.lane.b32.xlu0 %v16_v4, %s38_s9 }
  0x7c   :  { %v12_v5 = vpop.permute.xlu0 %11   ;;  %v24_v6 = vpop.permute.xlu1 %23  }
  0x7d   :  { %14 = vst.msk [vmem:[#allocation0] sm:$0x1] %vm13_vm1, %v12_v5  }
  0x80   :  { %v18_v7 = vpop.permute.xlu0 %17  }
  0x81   :  { %20 = vst.msk [vmem:[#allocation0] sm:$0x1] %vm19_vm2, %v18_v7  }
  0x82   :  { %26 = vst.msk [vmem:[#allocation0] sm:$0x1] %vm25_vm3, %v24_v6  }
  0x89   :  { %v30_v8 = vld [vmem:[#allocation0] sm:$0x1] }
  0x8a   :  { %32 = vst [vmem:[%s56_s1] sm:$0x1] %v30_v8 }

// kernel: attention_forward.1
= control target key start
LH: loop header
LB: loop body
LE: loop exit
PB: predicated region body
PF: predicated region fallthrough
CT: control target
= control target key end

     0   :  { %v540_v0 = vmov 0.0|0.0   ;;  %vm541_vm0 = vmmov 0   ;;  %v542_v4 = vmov 0.0   ;;  %vm201_vm1 = vcmask 1043456   ;;  %s760_s1 = inlined_call_operand.vmem [shape: f32[128,128], index: 1, kind: input, shape index: {}]   ;;  %s761_s3 = inlined_call_operand.vmem [shape: f32[128,128], index: 3, kind: input, shape index: {}]   ;;  %s762_s0 = inlined_call_operand.vmem [shape: f32[4,128], index: 0, kind: input, shape index: {}]   ;;  %s763_s2 = inlined_call_operand.vmem [shape: f32[1,128], index: 2, kind: input, shape index: {}]   ;;  %s764_s4 = inlined_call_operand.vmem [shape: f32[128,128], index: 4, kind: input, shape index: {}]   ;;  %s765_s5 = inlined_call_operand.vmem [shape: f32[4,128], index: 5, kind: output, shape index: {}]  }
   0x1   :  { %459 = vmatprep.subr.bf16.mxu0 %v540_v0  ;;  %v21_v1 = vld [vmem:[%s760_s1] sm:$0xff]  ;;  %v22_v2 = vld [vmem:[%s760_s1 + $0x8] sm:$0xff]  ;;  %v23_v3 = vld [vmem:[%s760_s1 + $0x10] sm:$0xff]  ;;  %386 = vmatprep.mubr.msk.f32.mxu0 %vm541_vm0, %v542_v4 }
   0x2   :  { %v460_v5 = vpack.c.bf16 %v22_v2, %v21_v1  ;;  %v24_v6 = vld [vmem:[%s760_s1 + $0x18] sm:$0xff]  ;;  %483 = vmatprep.subr.bf16.mxu1 %v540_v0  ;;  %421 = vmatprep.mubr.msk.f32.mxu1 %vm541_vm0, %v542_v4  ;;  %v25_v8 = vld [vmem:[%s760_s1 + $0x20] sm:$0xff]  ;;  %v26_v9 = vld [vmem:[%s760_s1 + $0x28] sm:$0xff] }
   0x3   :  { %v463_v7 = vpack.c.bf16 %v24_v6, %v23_v3  ;;  %v115_v10 = vld [vmem:[%s761_s3] sm:$0xff]  ;;  %v116_v11 = vld [vmem:[%s761_s3 + $0x8] sm:$0xff]  ;;  %v117_v12 = vld [vmem:[%s761_s3 + $0x10] sm:$0xff]  ;;  %v466_v14 = vpack.c.bf16 %v26_v9, %v25_v8 }
   0x4   :  { %461 = vmatpush3.bf16.msra.mxu0 %v460_v5  ;;  %v118_v13 = vld [vmem:[%s761_s3 + $0x18] sm:$0xff]  ;;  %v484_v15 = vpack.c.bf16 %v116_v11, %v115_v10  ;;  %v27_v16 = vld [vmem:[%s760_s1 + $0x30] sm:$0xff]  ;;  %v119_v19 = vld [vmem:[%s761_s3 + $0x20] sm:$0xff] }
   0x5   :  { %462 = vmatprep.subr.bf16.mxu0 %v540_v0  ;;  %v28_v17 = vld [vmem:[%s760_s1 + $0x38] sm:$0xff]  ;;  %v487_v18 = vpack.c.bf16 %v118_v13, %v117_v12  ;;  %v120_v20 = vld [vmem:[%s761_s3 + $0x28] sm:$0xff]  ;;  %v29_v22 = vld [vmem:[%s760_s1 + $0x40] sm:$0xff] }
   0x6   :  { %485 = vmatpush3.bf16.msra.mxu1 %v484_v15  ;;  %v469_v21 = vpack.c.bf16 %v28_v17, %v27_v16  ;;  %v30_v23 = vld [vmem:[%s760_s1 + $0x48] sm:$0xff]  ;;  %v490_v24 = vpack.c.bf16 %v120_v20, %v119_v19  ;;  %v121_v25 = vld [vmem:[%s761_s3 + $0x30] sm:$0xff]  ;;  %v122_v26 = vld [vmem:[%s761_s3 + $0x38] sm:$0xff] }
   0x7   :  { %486 = vmatprep.subr.bf16.mxu1 %v540_v0  ;;  %v472_v27 = vpack.c.bf16 %v30_v23, %v29_v22  ;;  %v31_v28 = vld [vmem:[%s760_s1 + $0x50] sm:$0xff]  ;;  %v32_v29 = vld [vmem:[%s760_s1 + $0x58] sm:$0xff]  ;;  %v493_v30 = vpack.c.bf16 %v122_v26, %v121_v25  ;;  %v123_v31 = vld [vmem:[%s761_s3 + $0x40] sm:$0xff] }
   0x8   :  { %464 = vmatpush3.bf16.msra.mxu0 %v463_v7  ;;  %v124_v32 = vld [vmem:[%s761_s3 + $0x48] sm:$0xff]  ;;  %v475_v33 = vpack.c.bf16 %v32_v29, %v31_v28  ;;  %v33_v34 = vld [vmem:[%s760_s1 + $0x60] sm:$0xff]  ;;  %v35_v38 = vld [vmem:[%s760_s1 + $0x70] sm:$0xff] }
   0x9   :  { %465 = vmatprep.subr.bf16.mxu0 %v540_v0  ;;  %v34_v35 = vld [vmem:[%s760_s1 + $0x68] sm:$0xff]  ;;  %v496_v36 = vpack.c.bf16 %v124_v32, %v123_v31  ;;  %v36_v39 = vld [vmem:[%s760_s1 + $0x78] sm:$0xff]  ;;  %v672_v41 = vld [vmem:[%s762_s0] sm:$0xf] }
   0xa   :  { %488 = vmatpush3.bf16.msra.mxu1 %v487_v18  ;;  %v478_v37 = vpack.c.bf16 %v34_v35, %v33_v34  ;;  %v481_v40 = vpack.c.bf16 %v36_v39, %v35_v38  ;;  %v125_v42 = vld [vmem:[%s761_s3 + $0x50] sm:$0xff]  ;;  %v126_v43 = vld [vmem:[%s761_s3 + $0x58] sm:$0xff]  ;;  %v127_v45 = vld [vmem:[%s761_s3 + $0x60] sm:$0xff] }
   0xb   :  { %489 = vmatprep.subr.bf16.mxu1 %v540_v0  ;;  %v499_v44 = vpack.c.bf16 %v126_v43, %v125_v42  ;;  %v128_v46 = vld [vmem:[%s761_s3 + $0x68] sm:$0xff]  ;;  %v129_v48 = vld [vmem:[%s761_s3 + $0x70] sm:$0xff]  ;;  %v130_v49 = vld [vmem:[%s761_s3 + $0x78] sm:$0xff] }
   0xc   :  { %467 = vmatpush3.bf16.msra.mxu0 %v466_v14  ;;  %v502_v47 = vpack.c.bf16 %v128_v46, %v127_v45  ;;  %v505_v50 = vpack.c.bf16 %v130_v49, %v129_v48  ;;  %v302_v51 = vld [vmem:[%s763_s2] ss:$0 sm:$0xff]  ;;  %v209_v57 = vld [vmem:[%s764_s4 + $0x8] sm:$0xff]  ;;  %v210_v58 = vld [vmem:[%s764_s4 + $0x10] sm:$0xff] }
   0xd   :  { %468 = vmatprep.subr.bf16.mxu0 %v540_v0  ;;  %v208_v56 = vld [vmem:[%s764_s4] sm:$0xff]  ;;  %v211_v60 = vld [vmem:[%s764_s4 + $0x18] sm:$0xff]  ;;  %v213_v63 = vld [vmem:[%s764_s4 + $0x28] sm:$0xff] }
   0xe   :  { %491 = vmatpush3.bf16.msra.mxu1 %v490_v24  ;;  %v508_v59 = vpack.c.bf16 %v209_v57, %v208_v56  ;;  %v511_v61 = vpack.c.bf16 %v211_v60, %v210_v58  ;;  %v212_v62 = vld [vmem:[%s764_s4 + $0x20] sm:$0xff]  ;;  %v214_v2 = vld [vmem:[%s764_s4 + $0x30] sm:$0xff]  ;;  %v215_v3 = vld [vmem:[%s764_s4 + $0x38] sm:$0xff] }
   0xf   :  { %492 = vmatprep.subr.bf16.mxu1 %v540_v0  ;;  %v514_v1 = vpack.c.bf16 %v213_v63, %v212_v62  ;;  %v216_v8 = vld [vmem:[%s764_s4 + $0x40] sm:$0xff]  ;;  %v217_v9 = vld [vmem:[%s764_s4 + $0x48] sm:$0xff]  ;;  %v218_v11 = vld [vmem:[%s764_s4 + $0x50] sm:$0xff] }
  0x10   :  { %470 = vmatpush3.bf16.msra.mxu0 %v469_v21  ;;  %v520_v10 = vpack.c.bf16 %v217_v9, %v216_v8  ;;  %v219_v12 = vld [vmem:[%s764_s4 + $0x58] sm:$0xff]  ;;  %v220_v14 = vld [vmem:[%s764_s4 + $0x60] sm:$0xff]  ;;  %v221_v15 = vld [vmem:[%s764_s4 + $0x68] sm:$0xff] }
  0x11   :  { %471 = vmatprep.subr.bf16.mxu0 %v540_v0  ;;  %v523_v13 = vpack.c.bf16 %v219_v12, %v218_v11  ;;  %v526_v16 = vpack.c.bf16 %v221_v15, %v220_v14  ;;  %v222_v17 = vld [vmem:[%s764_s4 + $0x70] sm:$0xff]  ;;  %v223_v18 = vld [vmem:[%s764_s4 + $0x78] sm:$0xff] }
  0x12   :  { %494 = vmatpush3.bf16.msra.mxu1 %v493_v30  ;;  %v529_v19 = vpack.c.bf16 %v223_v18, %v222_v17 }
  0x13   :  { %495 = vmatprep.subr.bf16.mxu1 %v540_v0 }
  0x14   :  { %473 = vmatpush3.bf16.msra.mxu0 %v472_v27 }
  0x15   :  { %474 = vmatprep.subr.bf16.mxu0 %v540_v0 }
  0x16   :  { %497 = vmatpush3.bf16.msra.mxu1 %v496_v36 }
  0x17   :  { %498 = vmatprep.subr.bf16.mxu1 %v540_v0 }
  0x18   :  { %476 = vmatpush3.bf16.msra.mxu0 %v475_v33 }
  0x19   :  { %477 = vmatprep.subr.bf16.mxu0 %v540_v0 }
  0x1a   :  { %500 = vmatpush3.bf16.msra.mxu1 %v499_v44 }
  0x1b   :  { %501 = vmatprep.subr.bf16.mxu1 %v540_v0 }
  0x1c   :  { %479 = vmatpush3.bf16.msra.mxu0 %v478_v37 }
  0x1d   :  { %480 = vmatprep.subr.bf16.mxu0 %v540_v0 }
  0x1e   :  { %503 = vmatpush3.bf16.msra.mxu1 %v502_v47 }
  0x1f   :  { %504 = vmatprep.subr.bf16.mxu1 %v540_v0 }
  0x20   :  { %482 = vmatpush3.bf16.msra.mxu0 %v481_v40 }
  0x21   :  { %507 = vmatprep.subr.bf16.mxu0 %v540_v0 }
  0x22   :  { %506 = vmatpush3.bf16.msra.mxu1 %v505_v50 }
  0x23   :  { %387 = vmatmul.mubr.f32.vlgmr.msra.gmra.mrb[0].mxu0 %v672_v41 }
  0x24   :  { %456 = vmatprep.mubr.msk.f32.mxu0 %vm541_vm0, %v542_v4  ;;  %509 = vmatpush3.bf16.msra.mxu0 %v508_v59  ;;  %v517_v4 = vpack.c.bf16 %v215_v3, %v214_v2 }
  0x25   :  { %510 = vmatprep.subr.bf16.mxu0 %v540_v0 }
  0x28   :  { %512 = vmatpush3.bf16.msra.mxu0 %v511_v61 }
  0x29   :  { %513 = vmatprep.subr.bf16.mxu0 %v540_v0 }
  0x2c   :  { %515 = vmatpush3.bf16.msra.mxu0 %v514_v1 }
  0x2d   :  { %516 = vmatprep.subr.bf16.mxu0 %v540_v0 }
  0x30   :  { %518 = vmatpush3.bf16.msra.mxu0 %v517_v4 }
  0x31   :  { %519 = vmatprep.subr.bf16.mxu0 %v540_v0 }
  0x34   :  { %521 = vmatpush3.bf16.msra.mxu0 %v520_v10 }
  0x35   :  { %522 = vmatprep.subr.bf16.mxu0 %v540_v0 }
  0x38   :  { %524 = vmatpush3.bf16.msra.mxu0 %v523_v13 }
  0x39   :  { %525 = vmatprep.subr.bf16.mxu0 %v540_v0 }
  0x3c   :  { %527 = vmatpush3.bf16.msra.mxu0 %v526_v16 }
  0x3d   :  { %528 = vmatprep.subr.bf16.mxu0 %v540_v0 }
  0x40   :  { %530 = vmatpush3.bf16.msra.mxu0 %v529_v19 }
  0xf6   :  { %v110_v52 = vpop.f32.mrb[0].mxu0 }
  0xf7   :  { %v111_v53 = vadd.f32 %v302_v51, %v110_v52  ;;  %v388_v54 = vpop.f32.mrb[1].mxu0 }
  0xf9   :  { %534 = vtanh.f32 %v111_v53 }
 0x103   :  { %v535_v55 = vpop.eup %534 }
 0x104   :  { %422 = vmatmul.mubr.f32.vlgmr.msra.gmra.mrb[0].mxu1 %v535_v55 }
 0x1d7   :  { %v197_v5 = vpop.f32.mrb[0].mxu1 }
 0x1d8   :  { %v423_v6 = vpop.f32.mrb[1].mxu1  ;;  %v202_v7 = vsel %vm201_vm1, %v197_v5, -inf }
 0x1d9   :  { %203 = vmax.xlane.f32.xlu0 %v202_v7 }
 0x266   :  { %v204_v20 = vpop.xlane.xlu0 %203 }
 0x267   :  { %v205_v21 = vsub.f32 %v197_v5, %v204_v20 }
 0x269   :  { %v206_v22 = vmul.f32 1.442695, %v205_v21 }
 0x26b   :  { %536 = vpow2.f32 %v206_v22 }
 0x275   :  { %v537_v23 = vpop.eup %536 }
 0x276   :  { %457 = vmatmul.mubr.f32.vlgmr.msra.gmra.mrb[2].mxu0 %v537_v23 }
 0x349   :  { %v290_v24 = vpop.f32.mrb[2].mxu0 }
 0x34a   :  { %538 = vrcp.f32 %v290_v24  ;;  %v458_v25 = vpop.f32.mrb[3].mxu0 }
 0x354   :  { %v539_v26 = vpop.eup %538 }
 0x355   :  { %v295_v27 = vmul.f32 %v539_v26, %v537_v23 }
 0x357   :  { %v296_v28 = vmul.f32 %v295_v27, %v672_v41 }
 0x359   :  { %297 = vst [vmem:[%s765_s5] sm:$0xf] %v296_v28 }

</bundles_post_ra>
